<compile_context>
chip_gen: v6e
topology: v6e:2x2x1
jax: 0.10.0
libtpu: 0.0.40
codegen_flags: <defaults>
</compile_context>

<pallas_src>
from functools import partial

import jax
import jax.numpy as jnp
from jax.experimental import pallas as pl
from jax.experimental.pallas import tpu as pltpu


def _round_up(x, m):
    return (x + m - 1) // m * m


# --------------------------------------------------------------------------
# One-time (cached) hardware / feature probes
# --------------------------------------------------------------------------

_BUFFERED_OK = None


def _buffered_weights_supported():
    """Probe once whether pipeline_mode=pl.Buffered(1) lowers/compiles on this jax."""
    global _BUFFERED_OK
    if _BUFFERED_OK is not None:
        return _BUFFERED_OK
    try:
        spec = pl.BlockSpec((8, 128), lambda i: (0, 0), pipeline_mode=pl.Buffered(1))

        def _probe_kernel(a_ref, o_ref):
            o_ref[...] = a_ref[...] * 2.0

        probe = pl.pallas_call(
            _probe_kernel,
            out_shape=jax.ShapeDtypeStruct((8, 128), jnp.float32),
            grid=(1,),
            in_specs=[spec],
            out_specs=pl.BlockSpec((8, 128), lambda i: (0, 0)),
        )
        jax.jit(probe).lower(jax.ShapeDtypeStruct((8, 128), jnp.float32)).compile()
        _BUFFERED_OK = True
    except Exception:
        _BUFFERED_OK = False
    return _BUFFERED_OK


_CHIP_INFO = None


def _chip_policy():
    """Returns (num_tensorcores, physical_vmem_bytes) with safe fallbacks."""
    global _CHIP_INFO
    if _CHIP_INFO is not None:
        return _CHIP_INFO
    cores, vmem = 1, 64 * 1024 * 1024  # conservative fallback (v7x-sized VMEM)
    try:
        info = pltpu.get_tpu_info()
        vmem = int(getattr(info, "vmem_capacity_bytes", vmem)) or vmem
        for name in ("num_tensorcores", "tensorcores_per_chip", "num_cores", "core_count"):
            v = getattr(info, name, None)
            if v:
                cores = int(v)
                break
    except Exception:
        pass
    _CHIP_INFO = (cores, vmem)
    return _CHIP_INFO


def _batch_tiling(B, batch_tile, num_cores):
    """Round tiles to bf16's 16-row sublane packing; split only if >1 TensorCore."""
    SUB = 16  # bf16 native sublane tile is (16, 128)
    tile = _round_up(max(batch_tile, SUB), SUB)
    tile = min(tile, _round_up(B, SUB))
    if num_cores > 1:
        # Keep at least `num_cores` grid steps when the batch allows (feeds both
        # v7x TensorCores); on single-core chips the grid is a serial loop, so
        # the largest tile wins.
        while _round_up(B, tile) // tile < num_cores and tile > SUB:
            tile = _round_up(tile // 2, SUB)
    B_p = _round_up(B, tile)
    return tile, B_p


# --------------------------------------------------------------------------
# Kernel
# --------------------------------------------------------------------------

def mlp_kernel(x_ref, w1_ref, b1_ref, w2_ref, b2_ref, w3_ref, b3_ref, o_ref):
    # Fused hot path: three MXU matmuls (bf16 operands, f32 accumulation) with
    # bias + ReLU epilogues in f32 on the VPU.  Dropout = identity (eval mode).
    x = x_ref[...]

    h1 = jnp.dot(x, w1_ref[...], preferred_element_type=jnp.float32) + b1_ref[...]
    h1 = jnp.maximum(h1, 0.0)

    h2 = jnp.dot(h1.astype(w2_ref.dtype), w2_ref[...],
                 preferred_element_type=jnp.float32) + b2_ref[...]
    h2 = jnp.maximum(h2, 0.0)

    out = jnp.dot(h2.astype(w3_ref.dtype), w3_ref[...],
                  preferred_element_type=jnp.float32) + b3_ref[...]
    o_ref[...] = out.astype(o_ref.dtype)


# --------------------------------------------------------------------------
# One-time parameter preparation (pad lane dims to 128, cast) — NOT per call.
# --------------------------------------------------------------------------

def prepare_params(params, *, compute_dtype=jnp.bfloat16):
    """Pad hidden/class lane dims to 128 and cast once.  Weights are stored
    pre-transposed as [in_features, out_features] (same math as x @ W.T + b).
    The K dim of w1 (input_size) is intentionally left unpadded."""
    LANE = 128
    in_dim, hid = params["w1"].shape
    n_cls = params["w3"].shape[1]
    hid_p = _round_up(hid, LANE)
    cls_p = _round_up(n_cls, LANE)

    def pad2(a, r, c, dt):
        return jnp.pad(a, ((0, r - a.shape[0]), (0, c - a.shape[1]))).astype(dt)

    w1 = pad2(params["w1"], in_dim, hid_p, compute_dtype)
    w2 = pad2(params["w2"], hid_p, hid_p, compute_dtype)
    w3 = pad2(params["w3"], hid_p, cls_p, compute_dtype)
    b1 = pad2(params["b1"].reshape(1, -1), 1, hid_p, jnp.float32)
    b2 = pad2(params["b2"].reshape(1, -1), 1, hid_p, jnp.float32)
    b3 = pad2(params["b3"].reshape(1, -1), 1, cls_p, jnp.float32)

    return dict(arrays=(w1, b1, w2, b2, w3, b3),
                num_classes=n_cls,
                compute_dtype=compute_dtype)


# --------------------------------------------------------------------------
# Jitted forward (pad/cast of x, pallas_call, output slice all fuse under jit)
# --------------------------------------------------------------------------

@partial(jax.jit, static_argnames=("n_cls", "batch_tile", "compute_dtype",
                                   "single_buffer_weights"))
def _forward_impl(x, w1, b1, w2, b2, w3, b3, *, n_cls, batch_tile,
                  compute_dtype, single_buffer_weights):
    B, in_dim = x.shape
    hid_p = w1.shape[1]
    cls_p = w3.shape[1]
    out_dtype = x.dtype

    num_cores, vmem_cap = _chip_policy()
    tile, B_p = _batch_tiling(B, batch_tile, num_cores)
    grid = (B_p // tile,)

    # Only the batch is padded; K (input_size) stays at its true width — last
    # block dim == full array dim is legal and avoids 4x activation DMA.
    xp = jnp.pad(x, ((0, B_p - B), (0, 0))).astype(compute_dtype)

    # ---- VMEM footprint estimate & chip-aware limit ------------------------
    itsz = jnp.dtype(compute_dtype).itemsize
    out_itsz = jnp.dtype(out_dtype).itemsize
    n_weight_bufs = 1 if single_buffer_weights else 2
    w_bytes = (w1.size + w2.size + w3.size) * itsz
    bias_bytes = (b1.size + b2.size + b3.size) * 4
    est = (n_weight_bufs * (w_bytes + bias_bytes)
           + 2 * tile * in_dim * itsz          # double-buffered x tiles
           + 2 * tile * cls_p * out_itsz       # double-buffered out tiles
           + 2 * tile * hid_p * 4              # f32 h1, h2
           + 2 * tile * hid_p * itsz           # bf16 re-casts of h1, h2
           + tile * cls_p * 4)                 # f32 logits before final cast
    budget = int(vmem_cap * 0.85)              # headroom for compiler scratch/sems
    if est <= 16 * 1024 * 1024:
        vmem_limit = None                      # default scoped VMEM is enough
    else:
        # Never declare a limit below our own estimate; cap at chip budget.
        # TODO(synk): if est exceeds `budget`, switch to a hidden-dim tiled path
        # (stream w1/w2/w3 N/K tiles + f32 VMEM accumulator) instead of failing.
        vmem_limit = min(max(int(est * 1.3), est), budget)

    # ---- Cost estimate (free scheduling hint for XLA) ----------------------
    flops = 2 * B_p * (in_dim * hid_p + hid_p * hid_p + hid_p * cls_p)
    bytes_accessed = int(
        B_p * in_dim * itsz
        + w_bytes + bias_bytes
        + B_p * cls_p * out_itsz)
    cost = pl.CostEstimate(flops=flops, transcendentals=0,
                           bytes_accessed=bytes_accessed)

    # ---- Block specs --------------------------------------------------------
    const_kwargs = {}
    if single_buffer_weights:
        # Grid-invariant blocks never get re-fetched -> one VMEM buffer suffices.
        const_kwargs = dict(pipeline_mode=pl.Buffered(1))

    def const_spec(shape):
        return pl.BlockSpec(shape, lambda i: (0, 0), **const_kwargs)

    out_p = pl.pallas_call(
        mlp_kernel,
        out_shape=jax.ShapeDtypeStruct((B_p, cls_p), out_dtype),
        grid=grid,
        in_specs=[
            pl.BlockSpec((tile, in_dim), lambda i: (i, 0)),   # x tile (K unpadded)
            const_spec((in_dim, hid_p)),                       # w1
            const_spec((1, hid_p)),                            # b1
            const_spec((hid_p, hid_p)),                        # w2
            const_spec((1, hid_p)),                            # b2
            const_spec((hid_p, cls_p)),                        # w3
            const_spec((1, cls_p)),                            # b3
        ],
        out_specs=pl.BlockSpec((tile, cls_p), lambda i: (i, 0)),
        compiler_params=pltpu.CompilerParams(
            dimension_semantics=("parallel",),
            vmem_limit_bytes=vmem_limit,
        ),
        cost_estimate=cost,
    )(xp, w1, b1, w2, b2, w3, b3)

    # Slice stays under jit -> fuses into the consumer, no extra HBM round-trip.
    return out_p[:B, :n_cls]


def mlp_classifier_forward(x, prepared, *, batch_tile=256):
    """x: [B, input_size] float32.  `prepared` from prepare_params()."""
    return _forward_impl(
        x, *prepared["arrays"],
        n_cls=prepared["num_classes"],
        batch_tile=batch_tile,
        compute_dtype=prepared["compute_dtype"],
        single_buffer_weights=_buffered_weights_supported(),
    )


# --------------------------------------------------------------------------
# Pure-JAX reference & deterministic init
# --------------------------------------------------------------------------

def mlp_reference(x, params, compute_dtype=jnp.float32):
    """Eval-mode (dropout = identity) reference with the same reduced-precision
    operands as the kernel."""
    c = lambda a: a.astype(compute_dtype).astype(jnp.float32)
    h1 = jnp.maximum(jnp.dot(c(x), c(params["w1"])) + params["b1"], 0.0)
    h2 = jnp.maximum(jnp.dot(c(h1), c(params["w2"])) + params["b2"], 0.0)
    return jnp.dot(c(h2), c(params["w3"])) + params["b3"]


def init_params(key, input_size, hidden_size, num_classes):
    """nn.Linear-style U(-1/sqrt(fan_in), 1/sqrt(fan_in)) init; weights stored
    pre-transposed as [in, out]."""
    ks = jax.random.split(key, 6)

    def linear(kw, kb, fan_in, fan_out):
        bound = 1.0 / jnp.sqrt(fan_in)
        w = jax.random.uniform(kw, (fan_in, fan_out), jnp.float32, -bound, bound)
        b = jax.random.uniform(kb, (fan_out,), jnp.float32, -bound, bound)
        return w, b

    w1, b1 = linear(ks[0], ks[1], input_size, hidden_size)
    w2, b2 = linear(ks[2], ks[3], hidden_size, hidden_size)
    w3, b3 = linear(ks[4], ks[5], hidden_size, num_classes)
    return dict(w1=w1, b1=b1, w2=w2, b2=b2, w3=w3, b3=b3)


if __name__ == "__main__":
    input_size, hidden_size, num_classes = 32, 32, 10
    batch = 8

    key = jax.random.PRNGKey(0)
    k_x, k_p = jax.random.split(key)
    x = jax.random.normal(k_x, (batch, input_size), jnp.float32)
    params = init_params(k_p, input_size, hidden_size, num_classes)

    prepared = prepare_params(params)                 # one-time pad + bf16 cast
    out = mlp_classifier_forward(x, prepared)
    out = jax.block_until_ready(out)
    assert out.shape == (batch, num_classes), out.shape

    ref = mlp_reference(x, params, compute_dtype=jnp.bfloat16)
    max_err = float(jnp.max(jnp.abs(out - ref)))
    assert jnp.allclose(out, ref, atol=2e-2, rtol=2e-2), max_err

    print("KERNEL_OK")
</pallas_src>

<mosaic_0001>
module attributes {stable_mosaic.version = 11 : i64} {
  func.func @mlp_kernel(%arg0: i32, %arg1: memref<16x32xbf16, #tpu.memory_space<vmem>>, %arg2: memref<32x128xbf16, #tpu.memory_space<vmem>>, %arg3: memref<1x128xf32, #tpu.memory_space<vmem>>, %arg4: memref<128x128xbf16, #tpu.memory_space<vmem>>, %arg5: memref<1x128xf32, #tpu.memory_space<vmem>>, %arg6: memref<128x128xbf16, #tpu.memory_space<vmem>>, %arg7: memref<1x128xf32, #tpu.memory_space<vmem>>, %arg8: memref<16x128xf32, #tpu.memory_space<vmem>>) attributes {dimension_semantics = [#tpu.dimension_semantics<parallel>], iteration_bounds = array<i64: 1>, scalar_prefetch = 0 : i64, scratch_operands = 0 : i64, tpu.core_type = #tpu.core_type<tc>, window_params = [{transform_indices = @transform_0, window_bounds = array<i64: 16, 32>}, {pipeline_mode = #tpu.pipeline_mode<synchronous>, transform_indices = @transform_1, window_bounds = array<i64: 32, 128>}, {pipeline_mode = #tpu.pipeline_mode<synchronous>, transform_indices = @transform_2, window_bounds = array<i64: 1, 128>}, {pipeline_mode = #tpu.pipeline_mode<synchronous>, transform_indices = @transform_3, window_bounds = array<i64: 128, 128>}, {pipeline_mode = #tpu.pipeline_mode<synchronous>, transform_indices = @transform_4, window_bounds = array<i64: 1, 128>}, {pipeline_mode = #tpu.pipeline_mode<synchronous>, transform_indices = @transform_5, window_bounds = array<i64: 128, 128>}, {pipeline_mode = #tpu.pipeline_mode<synchronous>, transform_indices = @transform_6, window_bounds = array<i64: 1, 128>}, {transform_indices = @transform_7, window_bounds = array<i64: 16, 128>}]} {
    %c0 = arith.constant 0 : index
    %c0_0 = arith.constant 0 : index
    %0 = vector.load %arg1[%c0, %c0_0] : memref<16x32xbf16, #tpu.memory_space<vmem>>, vector<16x32xbf16>
    %c0_1 = arith.constant 0 : index
    %c0_2 = arith.constant 0 : index
    %1 = vector.load %arg2[%c0_1, %c0_2] : memref<32x128xbf16, #tpu.memory_space<vmem>>, vector<32x128xbf16>
    %cst = arith.constant dense<0.000000e+00> : vector<16x128xf32>
    %2 = tpu.matmul %0, %1, %cst {dimension_numbers = #tpu.dot_dimension_numbers<[1], [0], [0], [1], [0, 0, 1, 1], [], []>} : vector<16x32xbf16>, vector<32x128xbf16>, vector<16x128xf32> -> vector<16x128xf32>
    %c0_3 = arith.constant 0 : index
    %c0_4 = arith.constant 0 : index
    %3 = vector.load %arg3[%c0_3, %c0_4] : memref<1x128xf32, #tpu.memory_space<vmem>>, vector<1x128xf32>
    %4 = vector.broadcast %3 : vector<1x128xf32> to vector<16x128xf32>
    %5 = arith.addf %2, %4 : vector<16x128xf32>
    %cst_5 = arith.constant 0.000000e+00 : f32
    %6 = vector.broadcast %cst_5 : f32 to vector<16x128xf32>
    %7 = arith.maximumf %5, %6 : vector<16x128xf32>
    %8 = arith.truncf %7 : vector<16x128xf32> to vector<16x128xbf16>
    %c0_6 = arith.constant 0 : index
    %c0_7 = arith.constant 0 : index
    %9 = vector.load %arg4[%c0_6, %c0_7] : memref<128x128xbf16, #tpu.memory_space<vmem>>, vector<128x128xbf16>
    %cst_8 = arith.constant dense<0.000000e+00> : vector<16x128xf32>
    %10 = tpu.matmul %8, %9, %cst_8 {dimension_numbers = #tpu.dot_dimension_numbers<[1], [0], [0], [1], [0, 0, 1, 1], [], []>} : vector<16x128xbf16>, vector<128x128xbf16>, vector<16x128xf32> -> vector<16x128xf32>
    %c0_9 = arith.constant 0 : index
    %c0_10 = arith.constant 0 : index
    %11 = vector.load %arg5[%c0_9, %c0_10] : memref<1x128xf32, #tpu.memory_space<vmem>>, vector<1x128xf32>
    %12 = vector.broadcast %11 : vector<1x128xf32> to vector<16x128xf32>
    %13 = arith.addf %10, %12 : vector<16x128xf32>
    %cst_11 = arith.constant 0.000000e+00 : f32
    %14 = vector.broadcast %cst_11 : f32 to vector<16x128xf32>
    %15 = arith.maximumf %13, %14 : vector<16x128xf32>
    %16 = arith.truncf %15 : vector<16x128xf32> to vector<16x128xbf16>
    %c0_12 = arith.constant 0 : index
    %c0_13 = arith.constant 0 : index
    %17 = vector.load %arg6[%c0_12, %c0_13] : memref<128x128xbf16, #tpu.memory_space<vmem>>, vector<128x128xbf16>
    %cst_14 = arith.constant dense<0.000000e+00> : vector<16x128xf32>
    %18 = tpu.matmul %16, %17, %cst_14 {dimension_numbers = #tpu.dot_dimension_numbers<[1], [0], [0], [1], [0, 0, 1, 1], [], []>} : vector<16x128xbf16>, vector<128x128xbf16>, vector<16x128xf32> -> vector<16x128xf32>
    %c0_15 = arith.constant 0 : index
    %c0_16 = arith.constant 0 : index
    %19 = vector.load %arg7[%c0_15, %c0_16] : memref<1x128xf32, #tpu.memory_space<vmem>>, vector<1x128xf32>
    %20 = vector.broadcast %19 : vector<1x128xf32> to vector<16x128xf32>
    %21 = arith.addf %18, %20 : vector<16x128xf32>
    %c0_17 = arith.constant 0 : index
    %c0_18 = arith.constant 0 : index
    %22 = vector.load %arg8[%c0_17, %c0_18] : memref<16x128xf32, #tpu.memory_space<vmem>>, vector<16x128xf32>
    tpu.vector_store %arg8[%c0_17, %c0_18], %21 {strides = array<i32>} : memref<16x128xf32, #tpu.memory_space<vmem>>, vector<16x128xf32>,
    return
  }
  func.func @transform_0(%arg0: i32) -> (i32, i32) {
    %c0_i32 = arith.constant 0 : i32
    %c0_i32_0 = arith.constant 0 : i32
    return %arg0, %c0_i32 : i32, i32
  }
  func.func @transform_1(%arg0: i32) -> (i32, i32) {
    %c0_i32 = arith.constant 0 : i32
    %c0_i32_0 = arith.constant 0 : i32
    %c0_i32_1 = arith.constant 0 : i32
    return %c0_i32, %c0_i32_0 : i32, i32
  }
  func.func @transform_2(%arg0: i32) -> (i32, i32) {
    %c0_i32 = arith.constant 0 : i32
    %c0_i32_0 = arith.constant 0 : i32
    %c0_i32_1 = arith.constant 0 : i32
    return %c0_i32, %c0_i32_0 : i32, i32
  }
  func.func @transform_3(%arg0: i32) -> (i32, i32) {
    %c0_i32 = arith.constant 0 : i32
    %c0_i32_0 = arith.constant 0 : i32
    %c0_i32_1 = arith.constant 0 : i32
    return %c0_i32, %c0_i32_0 : i32, i32
  }
  func.func @transform_4(%arg0: i32) -> (i32, i32) {
    %c0_i32 = arith.constant 0 : i32
    %c0_i32_0 = arith.constant 0 : i32
    %c0_i32_1 = arith.constant 0 : i32
    return %c0_i32, %c0_i32_0 : i32, i32
  }
  func.func @transform_5(%arg0: i32) -> (i32, i32) {
    %c0_i32 = arith.constant 0 : i32
    %c0_i32_0 = arith.constant 0 : i32
    %c0_i32_1 = arith.constant 0 : i32
    return %c0_i32, %c0_i32_0 : i32, i32
  }
  func.func @transform_6(%arg0: i32) -> (i32, i32) {
    %c0_i32 = arith.constant 0 : i32
    %c0_i32_0 = arith.constant 0 : i32
    %c0_i32_1 = arith.constant 0 : i32
    return %c0_i32, %c0_i32_0 : i32, i32
  }
  func.func @transform_7(%arg0: i32) -> (i32, i32) {
    %c0_i32 = arith.constant 0 : i32
    %c0_i32_0 = arith.constant 0 : i32
    return %arg0, %c0_i32 : i32, i32
  }
}

</mosaic_0001>

<bundles_post_ra>
// kernel: _forward_impl.1
= control target key start
LH: loop header
LB: loop body
LE: loop exit
PB: predicated region body
PF: predicated region fallthrough
CT: control target
= control target key end

     0   :  { %12 = vsyncpa [#allocation3], 0  ;;  %s629_s0 = inlined_call_operand.vmem [shape: bf16[16,32], index: 0, kind: input, shape index: {}]   ;;  %s630_s1 = inlined_call_operand.vmem [shape: bf16[32,128], index: 1, kind: input, shape index: {}]   ;;  %s631_s2 = inlined_call_operand.vmem [shape: f32[1,128], index: 2, kind: input, shape index: {}]   ;;  %s632_s3 = inlined_call_operand.hbm [shape: bf16[128,128], index: 3, kind: input, shape index: {}]   ;;  %s633_s4 = inlined_call_operand.vmem [shape: f32[1,128], index: 4, kind: input, shape index: {}]   ;;  %s634_s5 = inlined_call_operand.hbm [shape: bf16[128,128], index: 5, kind: input, shape index: {}]   ;;  %s635_s6 = inlined_call_operand.vmem [shape: f32[1,128], index: 6, kind: input, shape index: {}]   ;;  %s636_s7 = inlined_call_operand.vmem [shape: f32[16,128], index: 7, kind: output, shape index: {}]  }
   0x1   :  { %13 = vsyncpa [#allocation5], 0  ;;  %s529_s24 = smov [#allocation2]  }
   0x2   :  { %s25_s25 = sshll.u32 %s529_s24, 4  ;;  %s26_s25 = int_to_ptr.vmem [resolvable:$true] %s25_s25 }
   0x3   :  { %s493_s26 = scalar_lea.vmem %s26_s25, 1024  ;;  %p498_p1 = scmp.lt.s32.totalorder %s26_s25, %s26_s25 }
   0x4   :  { %p494_p0 = scmp.ne.s32.totalorder %s26_s25, %s493_s26  ;;  %p499_p2 = scmp.lt.s32.totalorder %s493_s26, %s493_s26 }
   0x6   :  { %p500_p3 = por %p499_p2, %p498_p1 }
   0x8   :  { %p501_p4 = pnand %p500_p3, %p494_p0 }
   0xa   :  { %504 = shalt.err (!%p501_p4)
}
   0xb   :  { %s530_s27 = smov 64   ;;  %s531_s28 = smov 4  }
   0xc   :  { %31 = dma.hbm_to_vmem [thread:$0]  %s632_s3, 1024, %s26_s25, [#allocation3], %s530_s27, %s530_s27, %s531_s28  }
   0xd   :  { %s532_s8 = smov [#allocation4]  }
   0xe   :  { %s39_s9 = sshll.u32 %s532_s8, 4  ;;  %s40_s9 = int_to_ptr.vmem [resolvable:$true] %s39_s9 }
   0xf   :  { %s513_s10 = scalar_lea.vmem %s40_s9, 1024  ;;  %p518_p6 = scmp.lt.s32.totalorder %s40_s9, %s40_s9 }
  0x10   :  { %p514_p5 = scmp.ne.s32.totalorder %s40_s9, %s513_s10  ;;  %p519_p7 = scmp.lt.s32.totalorder %s513_s10, %s513_s10 }
  0x12   :  { %p520_p8 = por %p519_p7, %p518_p6 }
  0x14   :  { %p521_p9 = pnand %p520_p8, %p514_p5 }
  0x16   :  { %524 = shalt.err (!%p521_p9)
}
  0x17   :  { %45 = dma.hbm_to_vmem [thread:$0]  %s634_s5, 1024, %s40_s9, [#allocation5], %s530_s27, %s530_s27, %s531_s28  }
  0x18   :  { %525 = dma.done.wait [#allocation3], 1024  }
  0x19   :  { %526 = vsyncadd [#allocation3], 4294966272 }
  0x1a   :  { %527 = dma.done.wait [#allocation5], 1024  }
  0x1b   :  { %528 = vsyncadd [#allocation5], 4294966272  ;;  %v533_v0 = vmov 0.0   ;;  %vm534_vm0 = vmmov 0   ;;  %v466_v1 = vld [vmem:[%s630_s1 + $0x8] sm:$0xff]   ;;  %v467_v2 = vld [vmem:[%s630_s1] sm:$0xff]  }
  0x1c   :  { %412 = vmatprep.subr.bf16.mxu0 %v533_v0  ;;  %416 = vmatprep.mubr.msk.bf16.mxu0 %vm534_vm0, %v533_v0  ;;  %v469_v3 = vld [vmem:[#allocation2 + $0x38] sm:$0xff]   ;;  %v468_v4 = vld [vmem:[%s629_s0] sm:$0xff]   ;;  %v470_v5 = vld [vmem:[#allocation2 + $0x30] sm:$0xff]   ;;  %vm85_vm1 = vcmask 261120  }
  0x1d   :  { %420 = vmatprep.subr.bf16.mxu1 %v533_v0  ;;  %436 = vmatprep.mubr.msk.bf16.mxu1 %vm534_vm0, %v533_v0  ;;  %v471_v6 = vld [vmem:[#allocation2 + $0x28] sm:$0xff]   ;;  %v472_v7 = vld [vmem:[#allocation2 + $0x20] sm:$0xff]   ;;  %v473_v8 = vld [vmem:[#allocation2 + $0x18] sm:$0xff]  }
  0x1e   :  { %413 = vmatpush3.bf16.msra.mxu0 %v466_v1  ;;  %421 = vmatpush3.bf16.msra.mxu1 %v469_v3  ;;  %v474_v9 = vld [vmem:[#allocation2 + $0x10] sm:$0xff]   ;;  %v475_v10 = vld [vmem:[#allocation2 + $0x8] sm:$0xff]   ;;  %v476_v11 = vld [vmem:[#allocation2] sm:$0xff]  }
  0x1f   :  { %414 = vmatprep.subr.bf16.mxu0 %v533_v0  ;;  %422 = vmatprep.subr.bf16.mxu1 %v533_v0  ;;  %v477_v12 = vld [vmem:[#allocation4 + $0x38] sm:$0xff]   ;;  %v478_v13 = vld [vmem:[#allocation4 + $0x30] sm:$0xff]   ;;  %v479_v14 = vld [vmem:[#allocation4 + $0x28] sm:$0xff]  }
  0x20   :  { %v480_v15 = vld [vmem:[#allocation4 + $0x20] sm:$0xff]   ;;  %v481_v16 = vld [vmem:[#allocation4 + $0x18] sm:$0xff]   ;;  %v482_v27 = vld [vmem:[#allocation4 + $0x10] sm:$0xff]  }
  0x21   :  { %v368_v17 = vld [vmem:[%s631_s2] ss:$0 sm:$0xff]  ;;  %v483_v28 = vld [vmem:[#allocation4 + $0x8] sm:$0xff]  }
  0x22   :  { %415 = vmatpush3.bf16.msra.mxu0 %v467_v2  ;;  %423 = vmatpush3.bf16.msra.mxu1 %v470_v5  ;;  %v484_v29 = vld [vmem:[#allocation4] sm:$0xff]  }
  0x23   :  { %440 = vmatprep.subr.bf16.mxu0 %v533_v0  ;;  %424 = vmatprep.subr.bf16.mxu1 %v533_v0  ;;  %v373_v30 = vld [vmem:[%s633_s4] ss:$0 sm:$0xff] }
  0x24   :  { %v382_v40 = vld [vmem:[%s635_s6] ss:$0 sm:$0xff] }
  0x25   :  { %417 = vmatmul.mubr.msk.bf16.vlgmr.msra.gmra.mxu0 %vm85_vm1, %v468_v4 }
  0x26   :  { %456 = vmatprep.mubr.msk.bf16.mxu0 %vm534_vm0, %v533_v0  ;;  %425 = vmatpush3.bf16.msra.mxu1 %v471_v6 }
  0x27   :  { %426 = vmatprep.subr.bf16.mxu1 %v533_v0  ;;  %441 = vmatpush3.bf16.msra.mxu0 %v477_v12 }
  0x28   :  { %442 = vmatprep.subr.bf16.mxu0 %v533_v0 }
  0x2a   :  { %427 = vmatpush3.bf16.msra.mxu1 %v472_v7 }
  0x2b   :  { %428 = vmatprep.subr.bf16.mxu1 %v533_v0  ;;  %443 = vmatpush3.bf16.msra.mxu0 %v478_v13 }
  0x2c   :  { %444 = vmatprep.subr.bf16.mxu0 %v533_v0 }
  0x2e   :  { %429 = vmatpush3.bf16.msra.mxu1 %v473_v8 }
  0x2f   :  { %430 = vmatprep.subr.bf16.mxu1 %v533_v0  ;;  %445 = vmatpush3.bf16.msra.mxu0 %v479_v14 }
  0x30   :  { %446 = vmatprep.subr.bf16.mxu0 %v533_v0 }
  0x32   :  { %431 = vmatpush3.bf16.msra.mxu1 %v474_v9 }
  0x33   :  { %432 = vmatprep.subr.bf16.mxu1 %v533_v0  ;;  %447 = vmatpush3.bf16.msra.mxu0 %v480_v15 }
  0x34   :  { %448 = vmatprep.subr.bf16.mxu0 %v533_v0 }
  0x36   :  { %433 = vmatpush3.bf16.msra.mxu1 %v475_v10 }
  0x37   :  { %434 = vmatprep.subr.bf16.mxu1 %v533_v0  ;;  %449 = vmatpush3.bf16.msra.mxu0 %v481_v16 }
  0x38   :  { %450 = vmatprep.subr.bf16.mxu0 %v533_v0 }
  0x3a   :  { %435 = vmatpush3.bf16.msra.mxu1 %v476_v11 }
  0x3b   :  { %451 = vmatpush3.bf16.msra.mxu0 %v482_v27 }
  0x3c   :  { %452 = vmatprep.subr.bf16.mxu0 %v533_v0 }
  0x3f   :  { %453 = vmatpush3.bf16.msra.mxu0 %v483_v28 }
  0x40   :  { %454 = vmatprep.subr.bf16.mxu0 %v533_v0 }
  0x43   :  { %455 = vmatpush3.bf16.msra.mxu0 %v484_v29 }
  0xe5   :  { %v123_v18 = vpop.f32.mrf.mxu0 }
  0xe6   :  { %v124_v20 = vadd.f32 %v368_v17, %v123_v18 }
  0xe7   :  { %v418_v19 = vpop.f32.mrf.mxu0 }
  0xe8   :  { %v130_v24 = vmax.f32 %v124_v20, 0.0 }
  0xe9   :  { %v126_v21 = vpop.f32.mrf.mxu0 }
  0xea   :  { %v127_v22 = vadd.f32 %v368_v17, %v126_v21 }
  0xeb   :  { %v419_v23 = vpop.f32.mrf.mxu0 }
  0xec   :  { %v131_v25 = vmax.f32 %v127_v22, 0.0 }
  0xee   :  { %v132_v26 = vpack.c.bf16 %v131_v25, %v130_v24 }
  0xf0   :  { %437 = vmatmul.mubr.bf16.vlgmr.msra.gmra.mxu1 %v132_v26 }
 0x1b0   :  { %v238_v31 = vpop.f32.mrf.mxu1 }
 0x1b1   :  { %v239_v33 = vadd.f32 %v373_v30, %v238_v31 }
 0x1b2   :  { %v438_v32 = vpop.f32.mrf.mxu1 }
 0x1b3   :  { %v245_v37 = vmax.f32 %v239_v33, 0.0 }
 0x1b4   :  { %v241_v34 = vpop.f32.mrf.mxu1 }
 0x1b5   :  { %v242_v35 = vadd.f32 %v373_v30, %v241_v34 }
 0x1b6   :  { %v439_v36 = vpop.f32.mrf.mxu1 }
 0x1b7   :  { %v246_v38 = vmax.f32 %v242_v35, 0.0 }
 0x1b9   :  { %v247_v39 = vpack.c.bf16 %v246_v38, %v245_v37 }
 0x1bb   :  { %457 = vmatmul.mubr.bf16.vlgmr.msra.gmra.mxu0 %v247_v39 }
 0x27b   :  { %v353_v41 = vpop.f32.mrf.mxu0 }
 0x27c   :  { %v354_v42 = vadd.f32 %v382_v40, %v353_v41 }
 0x27d   :  { %v458_v43 = vpop.f32.mrf.mxu0 }
 0x27e   :  { %360 = vst [vmem:[%s636_s7] sm:$0xff] %v354_v42 }
 0x27f   :  { %v356_v44 = vpop.f32.mrf.mxu0 }
 0x280   :  { %v357_v45 = vadd.f32 %v382_v40, %v356_v44 }
 0x281   :  { %v459_v46 = vpop.f32.mrf.mxu0 }
 0x282   :  { %361 = vst [vmem:[%s636_s7 + $0x8] sm:$0xff] %v357_v45 }
 0x283   :  { %366 = vsyncpa [#allocation3], 1 }
 0x284   :  { %367 = vsyncpa [#allocation5], 1 }

</bundles_post_ra>
